<compile_context>
chip_gen: v7x
topology: tpu7x:2x2x1
jax: 0.10.0
libtpu: 0.0.40
codegen_flags: <defaults>
</compile_context>

<pallas_src>
import functools

import jax
import jax.numpy as jnp
from jax.experimental import pallas as pl
from jax.experimental.pallas import tpu as pltpu

LANE = 128     # TPU lane width (last dim)
SUBLANE = 8    # TPU sublane width (second-to-last dim)


def _round_up(x, m):
    return (x + m - 1) // m * m


def _cdiv(a, b):
    return (a + b - 1) // b


def _pad2d(a, rows, cols):
    r, c = a.shape
    if r == rows and c == cols:
        return a
    return jnp.pad(a, ((0, rows - r), (0, cols - c)))


def dqn_kernel(x_ref, w1_ref, b1_ref, w2_ref, b2_ref, w3_ref, b3_ref, o_ref):
    # layer1 + ReLU: tiny-K matmul (K = padded n_obs), f32 accumulation on MXU
    h1 = jnp.dot(x_ref[...], w1_ref[...], preferred_element_type=jnp.float32)
    h1 = jnp.maximum(h1 + b1_ref[...], 0.0)          # bias/ReLU in f32 (VPU)
    # layer2 + ReLU
    h2 = jnp.dot(h1.astype(w2_ref.dtype), w2_ref[...],
                 preferred_element_type=jnp.float32)
    h2 = jnp.maximum(h2 + b2_ref[...], 0.0)
    # layer3 (no activation); action lanes padded to 128 -> unmasked stores
    out = jnp.dot(h2.astype(w3_ref.dtype), w3_ref[...],
                  preferred_element_type=jnp.float32)
    out = out + b3_ref[...]
    o_ref[...] = out.astype(o_ref.dtype)


def prepare_params(w1, b1, w2, b2, w3, b3, compute_dtype=jnp.bfloat16):
    """Pad + cast the parameters ONCE, outside the step loop.

    Weights are stored [in, out] (pre-transposed vs torch nn.Linear); biases
    stay f32 so bias-add/ReLU run as f32 VPU ops on every TPU generation.
    """
    cd = jnp.dtype(compute_dtype)
    n_obs, hidden = w1.shape
    n_actions = w3.shape[1]
    obs_p = _round_up(n_obs, SUBLANE)     # only sublane-pad the tiny obs dim
    hid_p = _round_up(hidden, LANE)
    act_p = _round_up(n_actions, LANE)
    return (
        _pad2d(w1, obs_p, hid_p).astype(cd),
        _pad2d(b1.reshape(1, -1), 1, hid_p).astype(jnp.float32),
        _pad2d(w2, hid_p, hid_p).astype(cd),
        _pad2d(b2.reshape(1, -1), 1, hid_p).astype(jnp.float32),
        _pad2d(w3, hid_p, act_p).astype(cd),
        _pad2d(b3.reshape(1, -1), 1, act_p).astype(jnp.float32),
    )


@functools.partial(jax.jit, static_argnames=("n_actions", "tile_b_max"))
def dqn_forward(x, params, *, n_actions, tile_b_max=512):
    w1_p, b1_p, w2_p, b2_p, w3_p, b3_p = params
    cd = w1_p.dtype                       # compute dtype comes from the params
    batch, _ = x.shape
    obs_p, hid_p = w1_p.shape
    act_p = w3_p.shape[1]

    # --- adaptive batch tile: >=2 grid steps when the batch allows it (v7x
    #     2-TC sharding), bounded pad waste, capped at tile_b_max ------------
    batch_su = _round_up(batch, SUBLANE)
    n_tiles = _cdiv(batch_su, tile_b_max)
    if n_tiles < 2 and batch_su > SUBLANE:
        n_tiles = 2
    tile_b = _round_up(_cdiv(batch_su, n_tiles), SUBLANE)
    batch_p = tile_b * n_tiles

    # only the activations get padded / cast per call (params were prepared)
    x_p = _pad2d(x, batch_p, obs_p).astype(cd)

    def resident(arr):
        # same block every grid step -> fetched once, stays VMEM-resident
        return pl.BlockSpec(arr.shape, lambda i: (0, 0))

    flops = 2 * batch_p * (obs_p * hid_p + hid_p * hid_p + hid_p * act_p)
    bytes_accessed = int(
        x_p.size * x_p.dtype.itemsize
        + sum(int(a.size) * a.dtype.itemsize
              for a in (w1_p, b1_p, w2_p, b2_p, w3_p, b3_p))
        + batch_p * act_p * jnp.dtype(cd).itemsize)

    out_p = pl.pallas_call(
        dqn_kernel,
        out_shape=jax.ShapeDtypeStruct((batch_p, act_p), cd),
        grid=(n_tiles,),
        in_specs=[
            pl.BlockSpec((tile_b, obs_p), lambda i: (i, 0)),  # x tiled over batch
            resident(w1_p), resident(b1_p),
            resident(w2_p), resident(b2_p),
            resident(w3_p), resident(b3_p),
        ],
        out_specs=pl.BlockSpec((tile_b, act_p), lambda i: (i, 0)),
        compiler_params=pltpu.CompilerParams(
            dimension_semantics=("parallel",),   # batch tiles shard across TCs
            vmem_limit_bytes=32 << 20,
        ),
        cost_estimate=pl.CostEstimate(
            flops=flops, transcendentals=0, bytes_accessed=bytes_accessed),
    )(x_p, w1_p, b1_p, w2_p, b2_p, w3_p, b3_p)

    # strip batch / action-lane padding; return f32 like the torch module
    return out_p[:batch, :n_actions].astype(jnp.float32)


def init_params(key, n_observations, n_actions, hidden=128):
    """Deterministic init mimicking torch nn.Linear default (U(+-1/sqrt(fan_in))).
    Weights stored as [in, out] (already transposed relative to torch)."""
    ks = jax.random.split(key, 6)

    def layer(kw, kb, fan_in, fan_out):
        bound = 1.0 / jnp.sqrt(jnp.float32(fan_in))
        w = jax.random.uniform(kw, (fan_in, fan_out), jnp.float32, -bound, bound)
        b = jax.random.uniform(kb, (1, fan_out), jnp.float32, -bound, bound)
        return w, b

    w1, b1 = layer(ks[0], ks[1], n_observations, hidden)
    w2, b2 = layer(ks[2], ks[3], hidden, hidden)
    w3, b3 = layer(ks[4], ks[5], hidden, n_actions)
    return w1, b1, w2, b2, w3, b3


def reference_forward(x, w1, b1, w2, b2, w3, b3):
    h1 = jnp.maximum(x @ w1 + b1, 0.0)
    h2 = jnp.maximum(h1 @ w2 + b2, 0.0)
    return h2 @ w3 + b3


if __name__ == "__main__":
    key = jax.random.PRNGKey(0)
    k_x, k_p = jax.random.split(key)

    # CartPole-like environment: 4 observations, 2 actions.
    n_obs, n_act = 4, 2
    raw = init_params(k_p, n_obs, n_act)

    params_bf16 = prepare_params(*raw)                             # default path
    params_f32 = prepare_params(*raw, compute_dtype=jnp.float32)   # exact path

    # Small inference batch plus a non-multiple-of-tile batch that exercises
    # the multi-tile grid (v7x 2-TC path) and the padding/slicing logic.
    for batch in (8, 260):
        x = jax.random.normal(jax.random.fold_in(k_x, batch),
                              (batch, n_obs), jnp.float32)
        ref = reference_forward(x, *raw)

        # bf16 MXU operands / f32 accumulation (default, all generations)
        out_bf16 = jax.block_until_ready(
            dqn_forward(x, params_bf16, n_actions=n_act))
        assert out_bf16.shape == (batch, n_act), out_bf16.shape
        assert jnp.allclose(out_bf16, ref, atol=5e-2, rtol=5e-2), "bf16 mismatch"

        # f32 path (near-exact vs reference)
        out_f32 = jax.block_until_ready(
            dqn_forward(x, params_f32, n_actions=n_act))
        assert out_f32.shape == (batch, n_act), out_f32.shape
        assert jnp.allclose(out_f32, ref, atol=1e-4, rtol=1e-4), "f32 mismatch"

    print("KERNEL_OK")
</pallas_src>

<mosaic_0001>
module attributes {stable_mosaic.version = 11 : i64} {
  func.func @dqn_kernel(%arg0: i32, %arg1: memref<8x8xbf16, #tpu.memory_space<vmem>>, %arg2: memref<8x128xbf16, #tpu.memory_space<vmem>>, %arg3: memref<1x128xf32, #tpu.memory_space<vmem>>, %arg4: memref<128x128xbf16, #tpu.memory_space<vmem>>, %arg5: memref<1x128xf32, #tpu.memory_space<vmem>>, %arg6: memref<128x128xbf16, #tpu.memory_space<vmem>>, %arg7: memref<1x128xf32, #tpu.memory_space<vmem>>, %arg8: memref<8x128xbf16, #tpu.memory_space<vmem>>) attributes {dimension_semantics = [#tpu.dimension_semantics<parallel>], iteration_bounds = array<i64: 1>, scalar_prefetch = 0 : i64, scratch_operands = 0 : i64, tpu.core_type = #tpu.core_type<tc>, window_params = [{transform_indices = @transform_0, window_bounds = array<i64: 8, 8>}, {pipeline_mode = #tpu.pipeline_mode<synchronous>, transform_indices = @transform_1, window_bounds = array<i64: 8, 128>}, {pipeline_mode = #tpu.pipeline_mode<synchronous>, transform_indices = @transform_2, window_bounds = array<i64: 1, 128>}, {pipeline_mode = #tpu.pipeline_mode<synchronous>, transform_indices = @transform_3, window_bounds = array<i64: 128, 128>}, {pipeline_mode = #tpu.pipeline_mode<synchronous>, transform_indices = @transform_4, window_bounds = array<i64: 1, 128>}, {pipeline_mode = #tpu.pipeline_mode<synchronous>, transform_indices = @transform_5, window_bounds = array<i64: 128, 128>}, {pipeline_mode = #tpu.pipeline_mode<synchronous>, transform_indices = @transform_6, window_bounds = array<i64: 1, 128>}, {transform_indices = @transform_7, window_bounds = array<i64: 8, 128>}]} {
    %c0 = arith.constant 0 : index
    %c0_0 = arith.constant 0 : index
    %0 = vector.load %arg1[%c0, %c0_0] : memref<8x8xbf16, #tpu.memory_space<vmem>>, vector<8x8xbf16>
    %c0_1 = arith.constant 0 : index
    %c0_2 = arith.constant 0 : index
    %1 = vector.load %arg2[%c0_1, %c0_2] : memref<8x128xbf16, #tpu.memory_space<vmem>>, vector<8x128xbf16>
    %cst = arith.constant dense<0.000000e+00> : vector<8x128xf32>
    %2 = tpu.matmul %0, %1, %cst {dimension_numbers = #tpu.dot_dimension_numbers<[1], [0], [0], [1], [0, 0, 1, 1], [], []>} : vector<8x8xbf16>, vector<8x128xbf16>, vector<8x128xf32> -> vector<8x128xf32>
    %c0_3 = arith.constant 0 : index
    %c0_4 = arith.constant 0 : index
    %3 = vector.load %arg3[%c0_3, %c0_4] : memref<1x128xf32, #tpu.memory_space<vmem>>, vector<1x128xf32>
    %4 = vector.broadcast %3 : vector<1x128xf32> to vector<8x128xf32>
    %5 = arith.addf %2, %4 : vector<8x128xf32>
    %cst_5 = arith.constant 0.000000e+00 : f32
    %6 = vector.broadcast %cst_5 : f32 to vector<8x128xf32>
    %7 = arith.maximumf %5, %6 : vector<8x128xf32>
    %8 = arith.truncf %7 : vector<8x128xf32> to vector<8x128xbf16>
    %c0_6 = arith.constant 0 : index
    %c0_7 = arith.constant 0 : index
    %9 = vector.load %arg4[%c0_6, %c0_7] : memref<128x128xbf16, #tpu.memory_space<vmem>>, vector<128x128xbf16>
    %cst_8 = arith.constant dense<0.000000e+00> : vector<8x128xf32>
    %10 = tpu.matmul %8, %9, %cst_8 {dimension_numbers = #tpu.dot_dimension_numbers<[1], [0], [0], [1], [0, 0, 1, 1], [], []>} : vector<8x128xbf16>, vector<128x128xbf16>, vector<8x128xf32> -> vector<8x128xf32>
    %c0_9 = arith.constant 0 : index
    %c0_10 = arith.constant 0 : index
    %11 = vector.load %arg5[%c0_9, %c0_10] : memref<1x128xf32, #tpu.memory_space<vmem>>, vector<1x128xf32>
    %12 = vector.broadcast %11 : vector<1x128xf32> to vector<8x128xf32>
    %13 = arith.addf %10, %12 : vector<8x128xf32>
    %cst_11 = arith.constant 0.000000e+00 : f32
    %14 = vector.broadcast %cst_11 : f32 to vector<8x128xf32>
    %15 = arith.maximumf %13, %14 : vector<8x128xf32>
    %16 = arith.truncf %15 : vector<8x128xf32> to vector<8x128xbf16>
    %c0_12 = arith.constant 0 : index
    %c0_13 = arith.constant 0 : index
    %17 = vector.load %arg6[%c0_12, %c0_13] : memref<128x128xbf16, #tpu.memory_space<vmem>>, vector<128x128xbf16>
    %cst_14 = arith.constant dense<0.000000e+00> : vector<8x128xf32>
    %18 = tpu.matmul %16, %17, %cst_14 {dimension_numbers = #tpu.dot_dimension_numbers<[1], [0], [0], [1], [0, 0, 1, 1], [], []>} : vector<8x128xbf16>, vector<128x128xbf16>, vector<8x128xf32> -> vector<8x128xf32>
    %c0_15 = arith.constant 0 : index
    %c0_16 = arith.constant 0 : index
    %19 = vector.load %arg7[%c0_15, %c0_16] : memref<1x128xf32, #tpu.memory_space<vmem>>, vector<1x128xf32>
    %20 = vector.broadcast %19 : vector<1x128xf32> to vector<8x128xf32>
    %21 = arith.addf %18, %20 : vector<8x128xf32>
    %22 = arith.truncf %21 : vector<8x128xf32> to vector<8x128xbf16>
    %c0_17 = arith.constant 0 : index
    %c0_18 = arith.constant 0 : index
    %23 = vector.load %arg8[%c0_17, %c0_18] : memref<8x128xbf16, #tpu.memory_space<vmem>>, vector<8x128xbf16>
    tpu.vector_store %arg8[%c0_17, %c0_18], %22 {strides = array<i32>} : memref<8x128xbf16, #tpu.memory_space<vmem>>, vector<8x128xbf16>,
    return
  }
  func.func @transform_0(%arg0: i32) -> (i32, i32) {
    %c0_i32 = arith.constant 0 : i32
    %c0_i32_0 = arith.constant 0 : i32
    return %arg0, %c0_i32 : i32, i32
  }
  func.func @transform_1(%arg0: i32) -> (i32, i32) {
    %c0_i32 = arith.constant 0 : i32
    %c0_i32_0 = arith.constant 0 : i32
    %c0_i32_1 = arith.constant 0 : i32
    return %c0_i32, %c0_i32_0 : i32, i32
  }
  func.func @transform_2(%arg0: i32) -> (i32, i32) {
    %c0_i32 = arith.constant 0 : i32
    %c0_i32_0 = arith.constant 0 : i32
    %c0_i32_1 = arith.constant 0 : i32
    return %c0_i32, %c0_i32_0 : i32, i32
  }
  func.func @transform_3(%arg0: i32) -> (i32, i32) {
    %c0_i32 = arith.constant 0 : i32
    %c0_i32_0 = arith.constant 0 : i32
    %c0_i32_1 = arith.constant 0 : i32
    return %c0_i32, %c0_i32_0 : i32, i32
  }
  func.func @transform_4(%arg0: i32) -> (i32, i32) {
    %c0_i32 = arith.constant 0 : i32
    %c0_i32_0 = arith.constant 0 : i32
    %c0_i32_1 = arith.constant 0 : i32
    return %c0_i32, %c0_i32_0 : i32, i32
  }
  func.func @transform_5(%arg0: i32) -> (i32, i32) {
    %c0_i32 = arith.constant 0 : i32
    %c0_i32_0 = arith.constant 0 : i32
    %c0_i32_1 = arith.constant 0 : i32
    return %c0_i32, %c0_i32_0 : i32, i32
  }
  func.func @transform_6(%arg0: i32) -> (i32, i32) {
    %c0_i32 = arith.constant 0 : i32
    %c0_i32_0 = arith.constant 0 : i32
    %c0_i32_1 = arith.constant 0 : i32
    return %c0_i32, %c0_i32_0 : i32, i32
  }
  func.func @transform_7(%arg0: i32) -> (i32, i32) {
    %c0_i32 = arith.constant 0 : i32
    %c0_i32_0 = arith.constant 0 : i32
    return %arg0, %c0_i32 : i32, i32
  }
}

</mosaic_0001>

<bundles_post_ra>
// kernel: dqn_forward.1
= control target key start
LH: loop header
LB: loop body
LE: loop exit
PB: predicated region body
PF: predicated region fallthrough
CT: control target
= control target key end

     0   :  { %12 = vsyncpa [#allocation3], 0  ;;  %s613_s0 = inlined_call_operand.vmem [shape: bf16[8,8], index: 0, kind: input, shape index: {}]   ;;  %s614_s1 = inlined_call_operand.vmem [shape: bf16[8,128], index: 1, kind: input, shape index: {}]   ;;  %s615_s2 = inlined_call_operand.vmem [shape: f32[1,128], index: 2, kind: input, shape index: {}]   ;;  %s616_s3 = inlined_call_operand.hbm [shape: bf16[128,128], index: 3, kind: input, shape index: {}]   ;;  %s617_s4 = inlined_call_operand.vmem [shape: f32[1,128], index: 4, kind: input, shape index: {}]   ;;  %s618_s5 = inlined_call_operand.hbm [shape: bf16[128,128], index: 5, kind: input, shape index: {}]   ;;  %s619_s6 = inlined_call_operand.vmem [shape: f32[1,128], index: 6, kind: input, shape index: {}]   ;;  %s620_s7 = inlined_call_operand.vmem [shape: bf16[8,128], index: 7, kind: output, shape index: {}]  }
   0x1   :  { %13 = vsyncpa [#allocation5], 0  ;;  %s502_s24 = smov [#allocation2]   ;;  %s454_s28 = scalar_lea.hbm %s616_s3, 1024 }
   0x2   :  { %s25_s25 = sshll.u32 %s502_s24, 4  ;;  %p455_p0 = scmp.ne.s32.totalorder %s616_s3, %s454_s28  ;;  %s26_s25 = int_to_ptr.vmem [resolvable:$true] %s25_s25 }
   0x3   :  { %p458_p1 = scmp.lt.u32.totalorder %s454_s28, %s616_s3 }
   0x5   :  { %p460_p2 = pnand %p458_p1, %p455_p0 }
   0x7   :  { %463 = shalt.err (!%p460_p2)
}
   0x8   :  { %s464_s10 = scalar_lea.vmem %s26_s25, 1024  ;;  %p469_p4 = scmp.lt.s32.totalorder %s26_s25, %s26_s25 }
   0x9   :  { %p465_p3 = scmp.ne.s32.totalorder %s26_s25, %s464_s10  ;;  %p470_p5 = scmp.lt.s32.totalorder %s464_s10, %s464_s10 }
   0xb   :  { %p471_p6 = por %p470_p5, %p469_p4 }
   0xd   :  { %p472_p7 = pnand %p471_p6, %p465_p3 }
   0xf   :  { %475 = shalt.err (!%p472_p7)
}
  0x10   :  { %s503_s11 = smov 64   ;;  %s504_s12 = smov 4  }
  0x11   :  { %31 = dma.hbm_to_vmem [thread:$0]  %s616_s3, 1024, %s26_s25, [#allocation3], %s503_s11, %s503_s11, %s504_s12  }
  0x12   :  { %s505_s15 = smov [#allocation4]   ;;  %s476_s19 = scalar_lea.hbm %s618_s5, 1024 }
  0x13   :  { %s39_s16 = sshll.u32 %s505_s15, 4  ;;  %p477_p8 = scmp.ne.s32.totalorder %s618_s5, %s476_s19  ;;  %s40_s16 = int_to_ptr.vmem [resolvable:$true] %s39_s16 }
  0x14   :  { %p480_p9 = scmp.lt.u32.totalorder %s476_s19, %s618_s5 }
  0x16   :  { %p482_p10 = pnand %p480_p9, %p477_p8 }
  0x18   :  { %485 = shalt.err (!%p482_p10)
}
  0x19   :  { %s486_s24 = scalar_lea.vmem %s40_s16, 1024  ;;  %p491_p12 = scmp.lt.s32.totalorder %s40_s16, %s40_s16 }
  0x1a   :  { %p487_p11 = scmp.ne.s32.totalorder %s40_s16, %s486_s24  ;;  %p492_p13 = scmp.lt.s32.totalorder %s486_s24, %s486_s24 }
  0x1c   :  { %p493_p0 = por %p492_p13, %p491_p12 }
  0x1e   :  { %p494_p1 = pnand %p493_p0, %p487_p11 }
  0x20   :  { %497 = shalt.err (!%p494_p1)
}
  0x21   :  { %45 = dma.hbm_to_vmem [thread:$0]  %s618_s5, 1024, %s40_s16, [#allocation5], %s503_s11, %s503_s11, %s504_s12  }
  0x22   :  { %498 = dma.done.wait [#allocation3], 1024  }
  0x23   :  { %499 = vsyncadd [#allocation3], 4294966272 }
  0x24   :  { %500 = dma.done.wait [#allocation5], 1024  }
  0x25   :  { %501 = vsyncadd [#allocation5], 4294966272  ;;  %v506_v0 = vmov 0.0   ;;  %vm507_vm0 = vmmov 0   ;;  %vm68_vm1 = vcmask 1043456   ;;  %vm64_vm2 = vcmask 64512  }
  0x26   :  { %386 = vmatprep.subr.bf16.mxu0 %v506_v0  ;;  %388 = vmatprep.mubr.msk.bf16.mxu0 %vm507_vm0, %v506_v0  ;;  %v56_v1 = vld [vmem:[%s614_s1] sm:$0xf]  ;;  %v439_v5 = vld [vmem:[#allocation2 + $0x8] sm:$0xff]   ;;  %v440_v6 = vld [vmem:[#allocation2 + $0x10] sm:$0xff]  }
  0x27   :  { %392 = vmatprep.subr.bf16.mxu1 %v506_v0  ;;  %408 = vmatprep.mubr.msk.bf16.mxu1 %vm507_vm0, %v506_v0  ;;  %v70_v2 = vsel %vm68_vm1, %v56_v1, 0  ;;  %v438_v3 = vld [vmem:[#allocation2] sm:$0xff]   ;;  %v441_v7 = vld [vmem:[#allocation2 + $0x18] sm:$0xff]   ;;  %v443_v9 = vld [vmem:[#allocation2 + $0x28] sm:$0xff]  }
  0x28   :  { %387 = vmatpush3.bf16.msra.mxu0 %v70_v2  ;;  %v55_v4 = vld [vmem:[%s613_s0] sm:$0xf]  ;;  %393 = vmatpush3.bf16.msra.mxu1 %v438_v3  ;;  %v444_v10 = vld [vmem:[#allocation2 + $0x30] sm:$0xff]   ;;  %v445_v11 = vld [vmem:[#allocation2 + $0x38] sm:$0xff]  }
  0x29   :  { %412 = vmatprep.subr.bf16.mxu0 %v506_v0  ;;  %394 = vmatprep.subr.bf16.mxu1 %v506_v0  ;;  %v442_v8 = vld [vmem:[#allocation2 + $0x20] sm:$0xff]   ;;  %v447_v13 = vld [vmem:[#allocation4 + $0x8] sm:$0xff]   ;;  %v448_v14 = vld [vmem:[#allocation4 + $0x10] sm:$0xff]  }
  0x2a   :  { %v446_v12 = vld [vmem:[#allocation4] sm:$0xff]   ;;  %v449_v15 = vld [vmem:[#allocation4 + $0x18] sm:$0xff]   ;;  %v451_v17 = vld [vmem:[#allocation4 + $0x28] sm:$0xff]  }
  0x2b   :  { %389 = vmatmul.mubr.msk.bf16.vlgmr.msra.gmra.mrb[0].mxu0 %vm64_vm2, %v55_v4  ;;  %v450_v16 = vld [vmem:[#allocation4 + $0x20] sm:$0xff]   ;;  %v452_v26 = vld [vmem:[#allocation4 + $0x30] sm:$0xff]   ;;  %v453_v27 = vld [vmem:[#allocation4 + $0x38] sm:$0xff]  }
  0x2c   :  { %428 = vmatprep.mubr.msk.bf16.mxu0 %vm507_vm0, %v506_v0  ;;  %395 = vmatpush3.bf16.msra.mxu1 %v439_v5  ;;  %v346_v18 = vld [vmem:[%s615_s2] ss:$0 sm:$0xff] }
  0x2d   :  { %396 = vmatprep.subr.bf16.mxu1 %v506_v0  ;;  %413 = vmatpush3.bf16.msra.mxu0 %v446_v12  ;;  %v348_v28 = vld [vmem:[%s617_s4] ss:$0 sm:$0xff] }
  0x2e   :  { %414 = vmatprep.subr.bf16.mxu0 %v506_v0  ;;  %v357_v36 = vld [vmem:[%s619_s6] ss:$0 sm:$0xff] }
  0x30   :  { %397 = vmatpush3.bf16.msra.mxu1 %v440_v6 }
  0x31   :  { %398 = vmatprep.subr.bf16.mxu1 %v506_v0  ;;  %415 = vmatpush3.bf16.msra.mxu0 %v447_v13 }
  0x32   :  { %416 = vmatprep.subr.bf16.mxu0 %v506_v0 }
  0x34   :  { %399 = vmatpush3.bf16.msra.mxu1 %v441_v7 }
  0x35   :  { %400 = vmatprep.subr.bf16.mxu1 %v506_v0  ;;  %417 = vmatpush3.bf16.msra.mxu0 %v448_v14 }
  0x36   :  { %418 = vmatprep.subr.bf16.mxu0 %v506_v0 }
  0x38   :  { %401 = vmatpush3.bf16.msra.mxu1 %v442_v8 }
  0x39   :  { %402 = vmatprep.subr.bf16.mxu1 %v506_v0  ;;  %419 = vmatpush3.bf16.msra.mxu0 %v449_v15 }
  0x3a   :  { %420 = vmatprep.subr.bf16.mxu0 %v506_v0 }
  0x3c   :  { %403 = vmatpush3.bf16.msra.mxu1 %v443_v9 }
  0x3d   :  { %404 = vmatprep.subr.bf16.mxu1 %v506_v0  ;;  %421 = vmatpush3.bf16.msra.mxu0 %v450_v16 }
  0x3e   :  { %422 = vmatprep.subr.bf16.mxu0 %v506_v0 }
  0x40   :  { %405 = vmatpush3.bf16.msra.mxu1 %v444_v10 }
  0x41   :  { %406 = vmatprep.subr.bf16.mxu1 %v506_v0  ;;  %423 = vmatpush3.bf16.msra.mxu0 %v451_v17 }
  0x42   :  { %424 = vmatprep.subr.bf16.mxu0 %v506_v0 }
  0x44   :  { %407 = vmatpush3.bf16.msra.mxu1 %v445_v11 }
  0x45   :  { %425 = vmatpush3.bf16.msra.mxu0 %v452_v26 }
  0x46   :  { %426 = vmatprep.subr.bf16.mxu0 %v506_v0 }
  0x49   :  { %427 = vmatpush3.bf16.msra.mxu0 %v453_v27 }
  0xfe   :  { %v106_v19 = vpop.f32.mrb[0].mxu0 }
  0xff   :  { %v107_v20 = vadd.f32 %v346_v18, %v106_v19  ;;  %v390_v21 = vpop.f32.mrb[1].mxu0 }
 0x100   :  { %v109_v22 = vpop.f32.mrb[2].mxu0 }
 0x101   :  { %v112_v23 = vmax.f32 %v107_v20, 0.0  ;;  %v391_v24 = vpop.f32.mrb[3].mxu0 }
 0x103   :  { %v113_v25 = vpack.c.bf16 %v112_v23, %v112_v23 }
 0x105   :  { %409 = vmatmul.mubr.bf16.vlgmr.msra.gmra.mrb[0].mxu1 %v113_v25 }
 0x1d8   :  { %v219_v29 = vpop.f32.mrb[0].mxu1 }
 0x1d9   :  { %v220_v30 = vadd.f32 %v348_v28, %v219_v29  ;;  %v410_v31 = vpop.f32.mrb[1].mxu1 }
 0x1da   :  { %v222_v32 = vpop.f32.mrb[2].mxu1 }
 0x1db   :  { %v225_v33 = vmax.f32 %v220_v30, 0.0  ;;  %v411_v34 = vpop.f32.mrb[3].mxu1 }
 0x1dd   :  { %v226_v35 = vpack.c.bf16 %v225_v33, %v225_v33 }
 0x1df   :  { %429 = vmatmul.mubr.bf16.vlgmr.msra.gmra.mrb[4].mxu0 %v226_v35 }
 0x2b2   :  { %v332_v37 = vpop.f32.mrb[4].mxu0 }
 0x2b3   :  { %v333_v38 = vadd.f32 %v357_v36, %v332_v37  ;;  %v430_v39 = vpop.f32.mrb[5].mxu0 }
 0x2b4   :  { %v335_v40 = vpop.f32.mrb[6].mxu0 }
 0x2b5   :  { %v338_v41 = vpack.c.bf16 %v333_v38, %v333_v38  ;;  %v431_v42 = vpop.f32.mrb[7].mxu0 }
 0x2b7   :  { %339 = vst [vmem:[%s620_s7] sm:$0xf] %v338_v41 }
 0x2b8   :  { %344 = vsyncpa [#allocation3], 1 }
 0x2b9   :  { %345 = vsyncpa [#allocation5], 1 }

</bundles_post_ra>
